<compile_context>
chip_gen: v5e
topology: v5e:2x2
jax: 0.10.0
libtpu: 0.0.40
codegen_flags: <defaults>
</compile_context>

<pallas_src>
import functools

import jax
import jax.numpy as jnp
from jax.experimental import pallas as pl
from jax.experimental.pallas import tpu as pltpu

EPS = 1e-5  # nn.LayerNorm default


def _round_up(x, m):
    return (x + m - 1) // m * m


def _device_kind():
    try:
        return jax.devices()[0].device_kind.lower()
    except Exception:
        return ""


def _device_vmem_bytes():
    try:
        return int(pltpu.get_tpu_info().vmem_capacity_bytes)
    except Exception:
        return (64 if "v7" in _device_kind() else 128) * 1024 * 1024


def _target_row_tile():
    kind = _device_kind()
    if "v5 lite" in kind or "v5e" in kind or "v5lite" in kind:
        return 256    # v5e: W stream already compute-bound at tm~256 (~240 FLOP/byte roofline)
    if "v7" in kind:
        return 512    # v7x: 64 MiB VMEM ceiling; ~620 FLOP/byte crossover
    if "v6" in kind:
        return 1024   # v6e: 128 MiB VMEM; W stream HBM-bound below ~650 FLOP/byte
    return 512


def _block_spec(shape, index_map, buffers=None):
    """BlockSpec with an optional explicit buffer count (graceful fallback)."""
    if buffers is not None and hasattr(pl, "Buffered"):
        try:
            return pl.BlockSpec(shape, index_map, pipeline_mode=pl.Buffered(buffers))
        except TypeError:
            pass
    return pl.BlockSpec(shape, index_map)


def _vmem_needed(tm, tn, Dp):
    return (tm * Dp * 4        # x full-row tile (f32, single-buffered)
            + 2 * Dp * 4       # gamma + beta (f32, single-buffered)
            + 2 * Dp * tn * 2  # W column tile (bf16, double-buffered / streamed)
            + 2 * tn * 4       # bias column tile (double-buffered)
            + 2 * tm * tn * 4  # output tile (double-buffered)
            + tm * Dp * 2)     # xn scratch (bf16)


def sublayer_conn_kernel(x_full_ref, gamma_ref, beta_ref, w_ref, b_ref,
                         o_ref, xn_ref, *, d_real):
    """Grid = (row tiles i, output-column tiles j).

    x_full_ref : (tm, Dp)  f32   full hidden row tile (LN input + residual), constant over j
    gamma/beta : (1, Dp)   f32   LayerNorm affine params (zero-padded)
    w_ref      : (Dp, tn)  bf16  column tile of the Linear weight
    b_ref      : (1, tn)   f32   column tile of the Linear bias
    o_ref      : (tm, tn)        output tile
    xn_ref     : (tm, Dp)  bf16  VMEM scratch, normalized activations (computed at j==0)
    """
    j = pl.program_id(1)
    Dp = x_full_ref.shape[1]
    tn = o_ref.shape[1]

    # --- LayerNorm once per row tile (hoisted out of the output-column loop) ---
    @pl.when(j == 0)
    def _():
        x = x_full_ref[...].astype(jnp.float32)
        inv_d = 1.0 / d_real
        # Padded hidden columns are zero, so plain sums give the real-column moments.
        sum_x = jnp.sum(x, axis=-1, keepdims=True)
        sum_x2 = jnp.sum(x * x, axis=-1, keepdims=True)
        mean = sum_x * inv_d
        var = jnp.maximum(sum_x2 * inv_d - mean * mean, 0.0)  # biased var, like PyTorch
        xn = (x - mean) * jax.lax.rsqrt(var + EPS)
        # gamma/beta are zero in the padded columns -> padded xn columns stay 0.
        xn = xn * gamma_ref[...] + beta_ref[...]
        xn_ref[...] = xn.astype(jnp.bfloat16)

    # --- sublayer: Linear — bf16 operands into the MXU, f32 accumulation ---
    y = jnp.dot(xn_ref[...], w_ref[...], preferred_element_type=jnp.float32)
    y = y + b_ref[...]

    # --- residual slice read from the resident full-row tile (no duplicated x input) ---
    if Dp == tn:                              # static: single column tile
        x_res = x_full_ref[...]
    else:
        col0 = pl.multiple_of(j * tn, 128)    # lane-aligned dynamic slice
        x_res = x_full_ref[:, pl.ds(col0, tn)]

    # --- dropout (eval mode => identity) + residual add in f32 ---
    o_ref[...] = (x_res.astype(jnp.float32) + y).astype(o_ref.dtype)


def sublayer_connection(x, gamma, beta, w, b, *, tn=512):
    """x: (B, S, D) float32. Returns x + Linear(LayerNorm(x)) (dropout in eval mode)."""
    B, S, D = x.shape
    M = B * S

    # Output-column tile: lane-dense and wide enough for the 2x256 MXU on v6e/v7x.
    # Pad the hidden dim UP to a multiple of tn rather than collapsing tn to 128.
    tn = max(128, min(tn, _round_up(D, 128)) // 128 * 128)
    Dp = _round_up(D, tn)

    # Row tile: generation-dependent target, shrunk for tiny inputs and the VMEM budget.
    vmem_cap = _device_vmem_bytes()
    tm = min(_target_row_tile(), _round_up(M, 16))
    if "v7" in _device_kind() and M > 256:
        # Keep >= 2 row tiles so the "parallel" axis can use both v7x TensorCores.
        while tm > 256 and pl.cdiv(M, tm) < 2:
            tm = _round_up(tm // 2, 16)
    while tm > 16 and _vmem_needed(tm, tn, Dp) > (vmem_cap * 3) // 4:
        tm = _round_up(tm // 2, 16)
    Mp = _round_up(M, tm)

    # --- operands (skip the zero-pad copies on the already-aligned fast path) ---
    xf = x.reshape(M, D)
    x2 = xf if (Mp, Dp) == (M, D) else jnp.zeros((Mp, Dp), x.dtype).at[:M, :D].set(xf)
    if Dp != D:
        gamma2 = jnp.zeros((1, Dp), jnp.float32).at[0, :D].set(gamma.astype(jnp.float32))
        beta2 = jnp.zeros((1, Dp), jnp.float32).at[0, :D].set(beta.astype(jnp.float32))
        b2 = jnp.zeros((1, Dp), jnp.float32).at[0, :D].set(b.astype(jnp.float32))
        # TODO(synk): in a real model, hoist this one-time W cast/pad to parameter setup;
        # it is per-call here only because the script is self-contained.
        w2 = jnp.zeros((Dp, Dp), jnp.bfloat16).at[:D, :D].set(w.astype(jnp.bfloat16))
    else:
        gamma2 = gamma.reshape(1, D).astype(jnp.float32)
        beta2 = beta.reshape(1, D).astype(jnp.float32)
        b2 = b.reshape(1, D).astype(jnp.float32)
        w2 = w.astype(jnp.bfloat16)

    # VMEM limit: 1.25x the tile working set, clamped to physical VMEM minus margin.
    vmem_needed = _vmem_needed(tm, tn, Dp)
    vmem_limit = int(min(max((vmem_needed * 5) // 4, 32 * 1024 * 1024),
                         vmem_cap - 2 * 1024 * 1024))

    kernel = functools.partial(sublayer_conn_kernel, d_real=float(D))

    out = pl.pallas_call(
        kernel,
        out_shape=jax.ShapeDtypeStruct((Mp, Dp), x.dtype),
        grid_spec=pltpu.PrefetchScalarGridSpec(
            num_scalar_prefetch=0,
            grid=(Mp // tm, Dp // tn),
            in_specs=[
                # Full hidden row (LN + residual); block index constant over j -> 1 buffer.
                _block_spec((tm, Dp), lambda i, j: (i, 0), buffers=1),
                _block_spec((1, Dp), lambda i, j: (0, 0), buffers=1),   # gamma (broadcast)
                _block_spec((1, Dp), lambda i, j: (0, 0), buffers=1),   # beta  (broadcast)
                pl.BlockSpec((Dp, tn), lambda i, j: (0, j)),            # W column tile (bf16)
                pl.BlockSpec((1, tn), lambda i, j: (0, j)),             # bias column tile
            ],
            out_specs=pl.BlockSpec((tm, tn), lambda i, j: (i, j)),
            scratch_shapes=[pltpu.VMEM((tm, Dp), jnp.bfloat16)],
        ),
        compiler_params=pltpu.CompilerParams(
            dimension_semantics=("parallel", "arbitrary"),
            vmem_limit_bytes=vmem_limit,
        ),
    )(x2, gamma2, beta2, w2, b2)

    return out[:M, :D].reshape(B, S, D)


def reference(x, gamma, beta, w, b):
    mean = jnp.mean(x, axis=-1, keepdims=True)
    var = jnp.mean((x - mean) ** 2, axis=-1, keepdims=True)
    xn = (x - mean) / jnp.sqrt(var + EPS) * gamma + beta
    y = xn @ w + b
    return x + y


if __name__ == "__main__":
    B, S, D = 2, 8, 32
    key = jax.random.PRNGKey(0)
    kx, kw, _ = jax.random.split(key, 3)

    x = jax.random.normal(kx, (B, S, D), dtype=jnp.float32)

    # Deterministic parameters (LayerNorm defaults ones/zeros; Linear small weights, zero bias).
    gamma = jnp.ones((D,), jnp.float32)
    beta = jnp.zeros((D,), jnp.float32)
    w = jax.random.normal(kw, (D, D), dtype=jnp.float32) * 0.02
    b = jnp.zeros((D,), jnp.float32)

    out = jax.block_until_ready(sublayer_connection(x, gamma, beta, w, b))
    ref = reference(x, gamma, beta, w, b)

    assert out.shape == (B, S, D)
    max_err = jnp.max(jnp.abs(out - ref))
    # bf16 MXU operands (f32 accumulation) loosen the matmul-term tolerance.
    assert jnp.allclose(out, ref, atol=1e-2, rtol=1e-2), f"mismatch vs reference: {max_err}"
    print("KERNEL_OK")
</pallas_src>

<mosaic_0001>
module attributes {stable_mosaic.version = 11 : i64} {
  func.func @sublayer_conn_kernel(%arg0: i32, %arg1: i32, %arg2: memref<16x128xf32, #tpu.memory_space<vmem>>, %arg3: memref<1x128xf32, #tpu.memory_space<vmem>>, %arg4: memref<1x128xf32, #tpu.memory_space<vmem>>, %arg5: memref<128x128xbf16, #tpu.memory_space<vmem>>, %arg6: memref<1x128xf32, #tpu.memory_space<vmem>>, %arg7: memref<16x128xf32, #tpu.memory_space<vmem>>, %arg8: memref<16x128xbf16, #tpu.memory_space<vmem>>) attributes {dimension_semantics = [#tpu.dimension_semantics<parallel>, #tpu.dimension_semantics<arbitrary>], iteration_bounds = array<i64: 1, 1>, scalar_prefetch = 0 : i64, scratch_operands = 1 : i64, tpu.core_type = #tpu.core_type<tc>, window_params = [{pipeline_mode = #tpu.pipeline_mode<synchronous>, transform_indices = @transform_0, window_bounds = array<i64: 16, 128>}, {pipeline_mode = #tpu.pipeline_mode<synchronous>, transform_indices = @transform_1, window_bounds = array<i64: 1, 128>}, {pipeline_mode = #tpu.pipeline_mode<synchronous>, transform_indices = @transform_2, window_bounds = array<i64: 1, 128>}, {transform_indices = @transform_3, window_bounds = array<i64: 128, 128>}, {transform_indices = @transform_4, window_bounds = array<i64: 1, 128>}, {transform_indices = @transform_5, window_bounds = array<i64: 16, 128>}]} {
    %c0_i32 = arith.constant 0 : i32
    %0 = arith.cmpi eq, %arg1, %c0_i32 : i32
    %1 = arith.extui %0 : i1 to i32
    %c0_i32_0 = arith.constant 0 : i32
    %2 = arith.cmpi ne, %1, %c0_i32_0 : i32
    scf.if %2 {
      %c0_10 = arith.constant 0 : index
      %c0_11 = arith.constant 0 : index
      %12 = vector.load %arg2[%c0_10, %c0_11] : memref<16x128xf32, #tpu.memory_space<vmem>>, vector<16x128xf32>
      %cst_12 = arith.constant dense<0.000000e+00> : vector<16xf32>
      %13 = vector.multi_reduction <add>, %12, %cst_12 [1] : vector<16x128xf32> to vector<16xf32>
      %14 = vector.shape_cast %13 : vector<16xf32> to vector<16x1xf32>
      %15 = arith.mulf %12, %12 : vector<16x128xf32>
      %cst_13 = arith.constant dense<0.000000e+00> : vector<16xf32>
      %16 = vector.multi_reduction <add>, %15, %cst_13 [1] : vector<16x128xf32> to vector<16xf32>
      %17 = vector.shape_cast %16 : vector<16xf32> to vector<16x1xf32>
      %cst_14 = arith.constant 3.125000e-02 : f32
      %18 = vector.broadcast %cst_14 : f32 to vector<16x1xf32>
      %19 = arith.mulf %14, %18 : vector<16x1xf32>
      %cst_15 = arith.constant 3.125000e-02 : f32
      %20 = vector.broadcast %cst_15 : f32 to vector<16x1xf32>
      %21 = arith.mulf %17, %20 : vector<16x1xf32>
      %22 = arith.mulf %19, %19 : vector<16x1xf32>
      %23 = arith.subf %21, %22 : vector<16x1xf32>
      %cst_16 = arith.constant 0.000000e+00 : f32
      %24 = vector.broadcast %cst_16 : f32 to vector<16x1xf32>
      %25 = arith.maximumf %23, %24 : vector<16x1xf32>
      %26 = vector.broadcast %19 : vector<16x1xf32> to vector<16x128xf32>
      %27 = arith.subf %12, %26 : vector<16x128xf32>
      %cst_17 = arith.constant 9.99999974E-6 : f32
      %28 = vector.broadcast %cst_17 : f32 to vector<16x1xf32>
      %29 = arith.addf %25, %28 : vector<16x1xf32>
      %30 = math.rsqrt %29 : vector<16x1xf32>
      %31 = vector.broadcast %30 : vector<16x1xf32> to vector<16x128xf32>
      %32 = arith.mulf %27, %31 : vector<16x128xf32>
      %c0_18 = arith.constant 0 : index
      %c0_19 = arith.constant 0 : index
      %33 = vector.load %arg3[%c0_18, %c0_19] : memref<1x128xf32, #tpu.memory_space<vmem>>, vector<1x128xf32>
      %34 = vector.broadcast %33 : vector<1x128xf32> to vector<16x128xf32>
      %35 = arith.mulf %32, %34 : vector<16x128xf32>
      %c0_20 = arith.constant 0 : index
      %c0_21 = arith.constant 0 : index
      %36 = vector.load %arg4[%c0_20, %c0_21] : memref<1x128xf32, #tpu.memory_space<vmem>>, vector<1x128xf32>
      %37 = vector.broadcast %36 : vector<1x128xf32> to vector<16x128xf32>
      %38 = arith.addf %35, %37 : vector<16x128xf32>
      %39 = arith.truncf %38 : vector<16x128xf32> to vector<16x128xbf16>
      %c0_22 = arith.constant 0 : index
      %c0_23 = arith.constant 0 : index
      %40 = vector.load %arg8[%c0_22, %c0_23] : memref<16x128xbf16, #tpu.memory_space<vmem>>, vector<16x128xbf16>
      tpu.vector_store %arg8[%c0_22, %c0_23], %39 {strides = array<i32>} : memref<16x128xbf16, #tpu.memory_space<vmem>>, vector<16x128xbf16>,
    } else {
    }
    %c0 = arith.constant 0 : index
    %c0_1 = arith.constant 0 : index
    %3 = vector.load %arg8[%c0, %c0_1] : memref<16x128xbf16, #tpu.memory_space<vmem>>, vector<16x128xbf16>
    %c0_2 = arith.constant 0 : index
    %c0_3 = arith.constant 0 : index
    %4 = vector.load %arg5[%c0_2, %c0_3] : memref<128x128xbf16, #tpu.memory_space<vmem>>, vector<128x128xbf16>
    %cst = arith.constant dense<0.000000e+00> : vector<16x128xf32>
    %5 = tpu.matmul %3, %4, %cst {dimension_numbers = #tpu.dot_dimension_numbers<[1], [0], [0], [1], [0, 0, 1, 1], [], []>} : vector<16x128xbf16>, vector<128x128xbf16>, vector<16x128xf32> -> vector<16x128xf32>
    %c0_4 = arith.constant 0 : index
    %c0_5 = arith.constant 0 : index
    %6 = vector.load %arg6[%c0_4, %c0_5] : memref<1x128xf32, #tpu.memory_space<vmem>>, vector<1x128xf32>
    %7 = vector.broadcast %6 : vector<1x128xf32> to vector<16x128xf32>
    %8 = arith.addf %5, %7 : vector<16x128xf32>
    %c0_6 = arith.constant 0 : index
    %c0_7 = arith.constant 0 : index
    %9 = vector.load %arg2[%c0_6, %c0_7] : memref<16x128xf32, #tpu.memory_space<vmem>>, vector<16x128xf32>
    %10 = arith.addf %9, %8 : vector<16x128xf32>
    %c0_8 = arith.constant 0 : index
    %c0_9 = arith.constant 0 : index
    %11 = vector.load %arg7[%c0_8, %c0_9] : memref<16x128xf32, #tpu.memory_space<vmem>>, vector<16x128xf32>
    tpu.vector_store %arg7[%c0_8, %c0_9], %10 {strides = array<i32>} : memref<16x128xf32, #tpu.memory_space<vmem>>, vector<16x128xf32>,
    return
  }
  func.func @transform_0(%arg0: i32, %arg1: i32) -> (i32, i32) {
    %c0_i32 = arith.constant 0 : i32
    %c0_i32_0 = arith.constant 0 : i32
    return %arg0, %c0_i32 : i32, i32
  }
  func.func @transform_1(%arg0: i32, %arg1: i32) -> (i32, i32) {
    %c0_i32 = arith.constant 0 : i32
    %c0_i32_0 = arith.constant 0 : i32
    %c0_i32_1 = arith.constant 0 : i32
    return %c0_i32, %c0_i32_0 : i32, i32
  }
  func.func @transform_2(%arg0: i32, %arg1: i32) -> (i32, i32) {
    %c0_i32 = arith.constant 0 : i32
    %c0_i32_0 = arith.constant 0 : i32
    %c0_i32_1 = arith.constant 0 : i32
    return %c0_i32, %c0_i32_0 : i32, i32
  }
  func.func @transform_3(%arg0: i32, %arg1: i32) -> (i32, i32) {
    %c0_i32 = arith.constant 0 : i32
    %c0_i32_0 = arith.constant 0 : i32
    return %c0_i32, %arg1 : i32, i32
  }
  func.func @transform_4(%arg0: i32, %arg1: i32) -> (i32, i32) {
    %c0_i32 = arith.constant 0 : i32
    %c0_i32_0 = arith.constant 0 : i32
    return %c0_i32, %arg1 : i32, i32
  }
  func.func @transform_5(%arg0: i32, %arg1: i32) -> (i32, i32) {
    %c0_i32 = arith.constant 0 : i32
    return %arg0, %arg1 : i32, i32
  }
}

</mosaic_0001>

<bundles_post_ra>
// kernel: tpu_custom_call.1
= control target key start
LH: loop header
LB: loop body
LE: loop exit
PB: predicated region body
PF: predicated region fallthrough
CT: control target
= control target key end

     0   :  { %10 = vsyncpa [#allocation4], 0  ;;  %s493_s0 = inlined_call_operand.hbm [shape: f32[16,128], index: 0, kind: input, shape index: {}]   ;;  %s494_s1 = inlined_call_operand.hbm [shape: f32[1,128], index: 1, kind: input, shape index: {}]   ;;  %s495_s2 = inlined_call_operand.vmem [shape: f32[1,128], index: 2, kind: input, shape index: {}]   ;;  %s496_s3 = inlined_call_operand.hbm [shape: bf16[128,128], index: 3, kind: input, shape index: {}]   ;;  %s497_s4 = inlined_call_operand.vmem [shape: f32[1,128], index: 4, kind: input, shape index: {}]   ;;  %s498_s5 = inlined_call_operand.hbm [shape: f32[16,128], index: 5, kind: output, shape index: {}]  }
   0x1   :  { %11 = vsyncpa [#allocation7], 0  ;;  %s31_s20 = sshll.u32 %s494_s1, 4  ;;  %s32_s20 = int_to_ptr.hbm [resolvable:$true] %s31_s20 }
   0x2   :  { %12 = vsyncpa [#allocation5], 0  ;;  %s417_s21 = smov [#allocation6]   ;;  %s17_s25 = sshll.u32 %s493_s0, 4  ;;  %s18_s25 = int_to_ptr.hbm [resolvable:$true] %s17_s25 }
   0x3   :  { %s33_s22 = sshll.u32 %s417_s21, 4  ;;  %s418_s26 = smov [#allocation3]   ;;  %s34_s22 = int_to_ptr.vmem [resolvable:$true] %s33_s22 }
   0x4   :  { %36 = dma.hbm_to_vmem [thread:$0]  %s32_s20, 16, %s34_s22, [#allocation7]  }
   0x5   :  { %s19_s27 = sshll.u32 %s418_s26, 4  ;;  %s419_s28 = smov 128   ;;  %s20_s27 = int_to_ptr.vmem [resolvable:$true] %s19_s27 }
   0x6   :  { %s420_s29 = smov 8   ;;  %s43_s6 = sshll.u32 %s496_s3, 4  ;;  %s44_s6 = int_to_ptr.hbm [resolvable:$true] %s43_s6 }
   0x7   :  { %25 = dma.hbm_to_vmem [thread:$0]  %s18_s25, 256, %s20_s27, [#allocation4], %s419_s28, %s419_s28, %s420_s29  }
   0x8   :  { %s421_s7 = smov [#allocation8]   ;;  %s422_s0 = smov 64  }
   0x9   :  { %s45_s8 = sshll.u32 %s421_s7, 4  ;;  %s423_s9 = smov 4   ;;  %s46_s8 = int_to_ptr.vmem [resolvable:$true] %s45_s8 }
   0xa   :  { %51 = dma.hbm_to_vmem [thread:$0]  %s44_s6, 1024, %s46_s8, [#allocation7], %s422_s0, %s422_s0, %s423_s9  }
   0xb   :  { %411 = dma.done.wait [#allocation4], 256  }
   0xc   :  { %412 = vsyncadd [#allocation4], 4294967040 }
   0xd   :  { %413 = dma.done.wait [#allocation7], 1040  }
   0xe   :  { %414 = vsyncadd [#allocation7], 4294966256  ;;  %v467_v0 = vld [vmem:[#allocation3] sm:$0xff]  ;;  %v472_v2 = vld [vmem:[#allocation3 + $0x8] sm:$0xff]  ;;  %s236_s16 = sshll.u32 %s498_s5, 4  ;;  %s237_s16 = int_to_ptr.hbm [resolvable:$true] %s236_s16 }
   0xf   :  { %72 = vadd.xlane.f32.xlu0 %v467_v0  ;;  %v76_v1 = vmul.f32 %v467_v0, %v467_v0  ;;  %v77_v3 = vmul.f32 %v472_v2, %v472_v2  ;;  %v294_v4 = vld [vmem:[#allocation8 + $0x38] sm:$0xff]  ;;  %v293_v5 = vld [vmem:[#allocation8 + $0x30] sm:$0xff]  ;;  %v292_v6 = vld [vmem:[#allocation8 + $0x28] sm:$0xff] }
  0x10   :  { %210 = vmatpush.bf16.msra.mxu0 %v294_v4  ;;  %v291_v10 = vld [vmem:[#allocation8 + $0x20] sm:$0xff]  ;;  %v290_v14 = vld [vmem:[#allocation8 + $0x18] sm:$0xff]  ;;  %v289_v20 = vld [vmem:[#allocation8 + $0x10] sm:$0xff] }
  0x11   :  { %78 = vadd.xlane.f32.xlu1 %v76_v1  ;;  %v288_v24 = vld [vmem:[#allocation8 + $0x8] sm:$0xff]  ;;  %v287_v26 = vld [vmem:[#allocation8] sm:$0xff]  ;;  %v308_v41 = vld [vmem:[#allocation6] ss:$0 sm:$0xff] }
  0x12   :  { %v309_v46 = vld [vmem:[%s495_s2] ss:$0 sm:$0xff]  ;;  %s424_s2 = smov [#allocation9]  }
  0x13   :  { %v310_v54 = vld [vmem:[%s497_s4] ss:$0 sm:$0xff]  ;;  %s234_s13 = sshll.u32 %s424_s2, 4  ;;  %s235_s13 = int_to_ptr.vmem [resolvable:$true] %s234_s13 }
  0x14   :  { %211 = vmatpush.bf16.msra.mxu0 %v293_v5 }
  0x17   :  { %74 = vadd.xlane.f32.xlu0 %v472_v2 }
  0x18   :  { %212 = vmatpush.bf16.msra.mxu0 %v292_v6 }
  0x19   :  { %80 = vadd.xlane.f32.xlu1 %v77_v3 }
  0x1c   :  { %213 = vmatpush.bf16.msra.mxu0 %v291_v10 }
  0x20   :  { %214 = vmatpush.bf16.msra.mxu0 %v290_v14 }
  0x24   :  { %215 = vmatpush.bf16.msra.mxu0 %v289_v20 }
  0x28   :  { %216 = vmatpush.bf16.msra.mxu0 %v288_v24 }
  0x2c   :  { %217 = vmatpush.bf16.msra.mxu0 %v287_v26 }
  0x82   :  { %v73_v7 = vpop.xlane.xlu0 %72 }
  0x83   :  { %v82_v8 = vmul.f32 0.03125, %v73_v7 }
  0x84   :  { %v79_v9 = vpop.xlane.xlu1 %78 }
  0x85   :  { %v86_v11 = vmul.f32 %v82_v8, %v82_v8  ;;  %v84_v12 = vmul.f32 0.03125, %v79_v9  ;;  %v92_v39 = vsub.f32 %v467_v0, %v82_v8 }
  0x87   :  { %v88_v13 = vsub.f32 %v84_v12, %v86_v11 }
  0x89   :  { %v90_v15 = vmax.f32 %v88_v13, 0.0 }
  0x8a   :  { %v75_v16 = vpop.xlane.xlu0 %74 }
  0x8b   :  { %v94_v17 = vadd.f32 1e-05, %v90_v15  ;;  %v83_v18 = vmul.f32 0.03125, %v75_v16 }
  0x8c   :  { %v81_v19 = vpop.xlane.xlu1 %80 }
  0x8d   :  { %311 = vrsqrt.f32 %v94_v17  ;;  %v87_v21 = vmul.f32 %v83_v18, %v83_v18  ;;  %v85_v22 = vmul.f32 0.03125, %v81_v19  ;;  %vm102_vm1 = vweird.f32 %v94_v17 }
  0x8e   :  { %v93_v44 = vsub.f32 %v472_v2, %v83_v18 }
  0x8f   :  { %v89_v23 = vsub.f32 %v85_v22, %v87_v21 }
  0x91   :  { %v91_v25 = vmax.f32 %v89_v23, 0.0 }
  0x93   :  { %v312_v27 = vpop.eup %311  ;;  %v95_v29 = vadd.f32 1e-05, %v91_v25 }
  0x94   :  { %v97_v28 = vmul.f32 %v312_v27, %v94_v17  ;;  %vm103_vm0 = vweird.f32 %v312_v27 }
  0x95   :  { %313 = vrsqrt.f32 %v95_v29  ;;  %vm104_vm2 = vmor %vm102_vm1, %vm103_vm0  ;;  %vm112_vm4 = vweird.f32 %v95_v29 }
  0x96   :  { %v98_v30 = vmul.f32 %v312_v27, %v97_v28 }
  0x98   :  { %v99_v31 = vmul.f32 0.5, %v98_v30 }
  0x9a   :  { %v100_v32 = vsub.f32 1.5, %v99_v31 }
  0x9b   :  { %v314_v33 = vpop.eup %313 }
  0x9c   :  { %v101_v34 = vmul.f32 %v312_v27, %v100_v32  ;;  %v107_v35 = vmul.f32 %v314_v33, %v95_v29  ;;  %vm113_vm3 = vweird.f32 %v314_v33 }
  0x9d   :  { %vm114_vm5 = vmor %vm112_vm4, %vm113_vm3 }
  0x9e   :  { %v108_v36 = vmul.f32 %v314_v33, %v107_v35  ;;  %v105_v37 = vsel %vm104_vm2, %v312_v27, %v101_v34 }
  0x9f   :  { %v116_v42 = vmul.f32 %v105_v37, %v92_v39 }
  0xa0   :  { %v109_v38 = vmul.f32 0.5, %v108_v36 }
  0xa1   :  { %v122_v47 = vmul.f32 %v308_v41, %v116_v42 }
  0xa2   :  { %v110_v40 = vsub.f32 1.5, %v109_v38 }
  0xa3   :  { %v128_v50 = vadd.f32 %v309_v46, %v122_v47 }
  0xa4   :  { %v111_v43 = vmul.f32 %v314_v33, %v110_v40 }
  0xa6   :  { %v115_v45 = vsel %vm114_vm5, %v314_v33, %v111_v43 }
  0xa7   :  { %v117_v48 = vmul.f32 %v115_v45, %v93_v44 }
  0xa9   :  { %v123_v49 = vmul.f32 %v308_v41, %v117_v48 }
  0xab   :  { %v129_v51 = vadd.f32 %v309_v46, %v123_v49 }
  0xad   :  { %v298_v52 = vpack.c.bf16 %v129_v51, %v128_v50 }
  0xaf   :  { %299 = vst [vmem:[#allocation2] sm:$0xff] %v298_v52  }
  0xb6   :  { %v286_v53 = vld [vmem:[#allocation2] sm:$0xff] }
  0xb7   :  { %218 = vmatmul.bf16.vlgmr.msra.gmra.mxu0 %v286_v53 }
 0x134   :  { %v219_v55 = vpop.f32.mrf.mxu0 }
 0x135   :  { %v220_v56 = vadd.f32 %v310_v54, %v219_v55 }
 0x137   :  { %v226_v57 = vadd.f32 %v220_v56, %v467_v0 }
 0x139   :  { %228 = vst [vmem:[#allocation9] sm:$0xff] %v226_v57 }
 0x13c   :  { %v221_v58 = vpop.f32.mrf.mxu0 }
 0x13d   :  { %v222_v59 = vadd.f32 %v310_v54, %v221_v58 }
 0x13f   :  { %v227_v60 = vadd.f32 %v222_v59, %v472_v2 }
 0x141   :  { %229 = vst [vmem:[#allocation9 + $0x8] sm:$0xff] %v227_v60 }
 0x142   :  { %242 = dma.vmem_to_hbm [thread:$0]  %s235_s13, 256, %s237_s16, [#allocation5], %s419_s28, %s419_s28, %s420_s29  }
 0x143   :  { %415 = dma.done.wait [#allocation5], 256  }
 0x144   :  { %416 = vsyncadd [#allocation5], 4294967040 }
 0x145   :  { %247 = vsyncpa [#allocation4], 1 }
 0x146   :  { %248 = vsyncpa [#allocation7], 1 }
 0x147   :  { %249 = vsyncpa [#allocation5], 1 }

</bundles_post_ra>
